<compile_context>
chip_gen: v6e
topology: v6e:2x2x1
jax: 0.10.0
libtpu: 0.0.40
codegen_flags: <defaults>
</compile_context>

<pallas_src>
import jax
import jax.numpy as jnp
from jax.experimental import pallas as pl
from jax.experimental.pallas import tpu as pltpu

BN_EPS = 1e-5
LEAKY_SLOPE = 0.1


def _round_up(x, m):
    return ((x + m - 1) // m) * m


def _conv_row_band(x_row_refs, w_ref):
    """Conv contribution of one output row (all images) as 9 shifted matmuls.

    x_row_refs: 3 refs (kh = 0, 1, 2), each (N, 1, Wp, Cin) bf16 = padded input
                row h + kh of every image in the batch.
    w_ref:      (9, Cin, COUT_PAD) bf16, (kh*3 + kw)-major.
    returns:    (N*W, COUT_PAD) f32 conv output for output row h of all images.
    """
    n, _, wp, cin = x_row_refs[0].shape
    w_out = wp - 2
    nw = n * w_out
    acc = None
    for kh in range(3):
        band = x_row_refs[kh][...].reshape(n, wp, cin)        # drop size-1 dim
        for kw in range(3):
            # in-VMEM im2col: shifted window along W, merged (n, w) rows
            lhs = band[:, kw:kw + w_out, :].reshape(nw, cin)  # bf16
            part = jnp.dot(lhs, w_ref[kh * 3 + kw],
                           preferred_element_type=jnp.float32)
            acc = part if acc is None else acc + part
    return acc


# ---------------------------------------------------------------------------
# Pass 1: conv (recomputed, never stored) + global per-channel sum / sumsq.
# Grid = (SPLIT, H // SPLIT); the leading axis is "parallel" so v7x's two TCs
# each produce an independent partial written to their own lane block.
# ---------------------------------------------------------------------------
def conv_stats_kernel(x0_ref, x1_ref, x2_ref, w_ref, sum_ref, sq_ref,
                      acc_sum, acc_sq):
    j = pl.program_id(1)

    @pl.when(j == 0)
    def _():
        acc_sum[...] = jnp.zeros_like(acc_sum)
        acc_sq[...] = jnp.zeros_like(acc_sq)

    y = _conv_row_band((x0_ref, x1_ref, x2_ref), w_ref)       # (N*W, C) f32
    acc_sum[...] += jnp.sum(y, axis=0, keepdims=True)
    acc_sq[...] += jnp.sum(y * y, axis=0, keepdims=True)

    @pl.when(j == pl.num_programs(1) - 1)
    def _():
        sum_ref[...] = acc_sum[...]
        sq_ref[...] = acc_sq[...]


# ---------------------------------------------------------------------------
# Pass 2: recompute the conv row, apply folded BN scale/offset + LeakyReLU,
# store bf16 NHWC with the true channel count (padded lanes never hit HBM).
# ---------------------------------------------------------------------------
def conv_bn_act_kernel(x0_ref, x1_ref, x2_ref, w_ref, scale_ref, offset_ref,
                       o_ref):
    y = _conv_row_band((x0_ref, x1_ref, x2_ref), w_ref)       # (N*W, C) f32
    y = y * scale_ref[...] + offset_ref[...]
    y = jnp.where(y > 0, y, LEAKY_SLOPE * y)
    n, _, w_out, cout = o_ref.shape
    o_ref[...] = y[:, :cout].reshape(n, 1, w_out, cout).astype(o_ref.dtype)


def cnn_block_forward(x_nchw, weight, gamma, beta, *, padding=1):
    """Conv3x3(stride 1) + BatchNorm(batch stats) + LeakyReLU(0.1).

    Returns bf16 NHWC (same values as the PyTorch module's NCHW output,
    transposed); keeping NHWC/bf16 end-to-end avoids an extra HBM relayout and
    halves the output write bytes.
    x_nchw: (N, Cin, H, W); weight: (Cout, Cin, 3, 3) (PyTorch layouts).
    """
    N, Cin, H, W = x_nchw.shape
    Cout, cin_w, KH, KW = weight.shape
    assert cin_w == Cin and KH == 3 and KW == 3 and padding == 1, (
        "kernel implements the 3x3 / stride-1 / pad-1 CNNBlock configuration")
    # TODO(synk): bn_act=False branch (plain conv + bias, no BN/LeakyReLU) not
    # implemented; only the default bn_act=True forward path is covered.

    # One-time input relayout NCHW -> padded NHWC (bf16).
    # TODO(synk): accept NHWC activations directly to skip this transpose when
    # CNNBlocks are chained.
    x_nhwc = jnp.transpose(x_nchw, (0, 2, 3, 1)).astype(jnp.bfloat16)
    xp = jnp.pad(x_nhwc, ((0, 0), (1, 1), (1, 1), (0, 0)))    # (N, Hp, Wp, Cin)
    Hp, Wp = H + 2, W + 2

    # Weights: (Cout, Cin, 3, 3) -> (kh*3+kw, Cin, COUT_PAD) bf16.  COUT_PAD
    # keeps the matmul N dim lane-dense; padded lanes are sliced off in-kernel
    # before the store so they never reach HBM.
    COUT_PAD = _round_up(max(Cout, 128), 128)
    w_k = jnp.transpose(weight, (2, 3, 1, 0)).reshape(9, Cin, Cout)
    w_k = jnp.pad(w_k, ((0, 0), (0, 0), (0, COUT_PAD - Cout))).astype(jnp.bfloat16)

    # Scoped-VMEM budget from the actual per-step footprint (double-buffered
    # row blocks + resident weights + f32 temporaries), clamped for v7x.
    x_blk = N * Wp * Cin * 2
    out_blk = N * W * Cout * 2
    w_blk = 9 * Cin * COUT_PAD * 2
    y_tmp = N * W * COUT_PAD * 4
    est = 2 * (3 * x_blk + out_blk) + 2 * w_blk + 6 * y_tmp + 8 * COUT_PAD * 4
    vmem_limit = int(min(64 * 2**20, max(32 * 2**20, 4 * est)))

    # ---- pass 1: global per-channel sum / sum-of-squares ----
    SPLIT = 2 if H % 2 == 0 else 1      # 2 partials -> one per v7x TensorCore
    rows_per_split = H // SPLIT

    x_specs_1 = [
        pl.BlockSpec((N, 1, Wp, Cin),
                     lambda i, j, kh=kh: (0, i * rows_per_split + j + kh, 0, 0))
        for kh in range(3)
    ]
    sum_parts, sq_parts = pl.pallas_call(
        conv_stats_kernel,
        out_shape=(jax.ShapeDtypeStruct((1, SPLIT * COUT_PAD), jnp.float32),
                   jax.ShapeDtypeStruct((1, SPLIT * COUT_PAD), jnp.float32)),
        grid_spec=pltpu.PrefetchScalarGridSpec(
            num_scalar_prefetch=0,
            grid=(SPLIT, rows_per_split),
            in_specs=[*x_specs_1,
                      pl.BlockSpec((9, Cin, COUT_PAD), lambda i, j: (0, 0, 0))],
            out_specs=[pl.BlockSpec((1, COUT_PAD), lambda i, j: (0, i)),
                       pl.BlockSpec((1, COUT_PAD), lambda i, j: (0, i))],
            scratch_shapes=[pltpu.VMEM((1, COUT_PAD), jnp.float32),
                            pltpu.VMEM((1, COUT_PAD), jnp.float32)],
        ),
        compiler_params=pltpu.CompilerParams(
            dimension_semantics=("parallel", "arbitrary"),
            vmem_limit_bytes=vmem_limit),
    )(xp, xp, xp, w_k)

    # Fold partial stats into BN scale/offset in (tiny) plain JAX.
    # TODO(synk): for very large N*H*W use a Chan/Welford combine; the one-pass
    # E[y^2] - mu^2 form can cancel in f32.
    M = N * H * W
    sum_c = jnp.sum(sum_parts.reshape(SPLIT, COUT_PAD), axis=0)
    sq_c = jnp.sum(sq_parts.reshape(SPLIT, COUT_PAD), axis=0)
    mean = sum_c / M
    var = jnp.maximum(sq_c / M - mean * mean, 0.0)
    gamma_p = jnp.pad(gamma.astype(jnp.float32), (0, COUT_PAD - Cout),
                      constant_values=1.0)
    beta_p = jnp.pad(beta.astype(jnp.float32), (0, COUT_PAD - Cout))
    scale_v = gamma_p * jax.lax.rsqrt(var + BN_EPS)
    offset_v = beta_p - mean * scale_v
    scale = scale_v.reshape(1, COUT_PAD)
    offset = offset_v.reshape(1, COUT_PAD)

    # ---- pass 2: conv + folded BN + LeakyReLU, bf16 NHWC output ----
    x_specs_2 = [
        pl.BlockSpec((N, 1, Wp, Cin), lambda h, kh=kh: (0, h + kh, 0, 0))
        for kh in range(3)
    ]
    out_nhwc = pl.pallas_call(
        conv_bn_act_kernel,
        out_shape=jax.ShapeDtypeStruct((N, H, W, Cout), jnp.bfloat16),
        grid_spec=pltpu.PrefetchScalarGridSpec(
            num_scalar_prefetch=0,
            grid=(H,),
            in_specs=[*x_specs_2,
                      pl.BlockSpec((9, Cin, COUT_PAD), lambda h: (0, 0, 0)),
                      pl.BlockSpec((1, COUT_PAD), lambda h: (0, 0)),
                      pl.BlockSpec((1, COUT_PAD), lambda h: (0, 0))],
            out_specs=pl.BlockSpec((N, 1, W, Cout), lambda h: (0, h, 0, 0)),
        ),
        compiler_params=pltpu.CompilerParams(
            dimension_semantics=("parallel",),
            vmem_limit_bytes=vmem_limit),
    )(xp, xp, xp, w_k, scale, offset)
    return out_nhwc


def reference_forward(x_nchw, weight, gamma, beta, *, padding=1,
                      matmul_dtype=jnp.float32):
    """Pure-JAX reference.  matmul_dtype=bfloat16 mirrors the kernel's MXU
    precision (bf16 operands, f32 accumulation); float32 is PyTorch semantics."""
    y = jax.lax.conv_general_dilated(
        x_nchw.astype(matmul_dtype), weight.astype(matmul_dtype),
        window_strides=(1, 1), padding=[(padding, padding)] * 2,
        dimension_numbers=("NCHW", "OIHW", "NCHW"),
        preferred_element_type=jnp.float32)
    mean = jnp.mean(y, axis=(0, 2, 3), keepdims=True)
    var = jnp.mean((y - mean) ** 2, axis=(0, 2, 3), keepdims=True)
    y = (y - mean) * jax.lax.rsqrt(var + BN_EPS)
    y = y * gamma.reshape(1, -1, 1, 1) + beta.reshape(1, -1, 1, 1)
    return jnp.where(y > 0, y, LEAKY_SLOPE * y)


if __name__ == "__main__":
    key = jax.random.PRNGKey(0)
    k_x, k_w, k_g, k_b = jax.random.split(key, 4)

    N, Cin, H, W = 2, 4, 16, 16
    Cout = 8

    x = jax.random.normal(k_x, (N, Cin, H, W), dtype=jnp.float32)
    # deterministic synthetic parameters (conv has no bias since bn_act=True)
    weight = jax.random.normal(k_w, (Cout, Cin, 3, 3), dtype=jnp.float32) * 0.1
    gamma = 1.0 + 0.1 * jax.random.normal(k_g, (Cout,), dtype=jnp.float32)
    beta = 0.1 * jax.random.normal(k_b, (Cout,), dtype=jnp.float32)

    out_nhwc = cnn_block_forward(x, weight, gamma, beta)
    out_nhwc = jax.block_until_ready(out_nhwc)
    assert out_nhwc.shape == (N, H, W, Cout)
    out_f32 = out_nhwc.astype(jnp.float32)

    # Check vs a reference matching the kernel's MXU precision (bf16 operands,
    # f32 accumulation); remaining gap is the bf16 rounding of the output.
    ref_bf16 = jnp.transpose(
        reference_forward(x, weight, gamma, beta, matmul_dtype=jnp.bfloat16),
        (0, 2, 3, 1))
    err_bf16 = float(jnp.max(jnp.abs(out_f32 - ref_bf16)))
    assert err_bf16 < 3e-2, f"mismatch vs bf16-precision reference: {err_bf16}"

    # Looser check vs the full-f32 (PyTorch-semantics) reference; the gap is
    # the bf16 rounding of the MXU operands plus the bf16 output store.
    ref_f32 = jnp.transpose(
        reference_forward(x, weight, gamma, beta, matmul_dtype=jnp.float32),
        (0, 2, 3, 1))
    err_f32 = float(jnp.max(jnp.abs(out_f32 - ref_f32)))
    assert err_f32 < 8e-2, f"mismatch vs f32 reference: {err_f32}"

    print("KERNEL_OK")
</pallas_src>

<mosaic_0001>
module attributes {stable_mosaic.version = 11 : i64} {
  func.func @conv_stats_kernel(%arg0: i32, %arg1: i32, %arg2: memref<2x1x18x4xbf16, #tpu.memory_space<vmem>>, %arg3: memref<2x1x18x4xbf16, #tpu.memory_space<vmem>>, %arg4: memref<2x1x18x4xbf16, #tpu.memory_space<vmem>>, %arg5: memref<9x4x128xbf16, #tpu.memory_space<vmem>>, %arg6: memref<1x128xf32, #tpu.memory_space<vmem>>, %arg7: memref<1x128xf32, #tpu.memory_space<vmem>>, %arg8: memref<1x128xf32, #tpu.memory_space<vmem>>, %arg9: memref<1x128xf32, #tpu.memory_space<vmem>>) attributes {dimension_semantics = [#tpu.dimension_semantics<parallel>, #tpu.dimension_semantics<arbitrary>], iteration_bounds = array<i64: 2, 8>, scalar_prefetch = 0 : i64, scratch_operands = 2 : i64, tpu.core_type = #tpu.core_type<tc>, window_params = [{transform_indices = @transform_0, window_bounds = array<i64: 2, 1, 18, 4>}, {transform_indices = @transform_1, window_bounds = array<i64: 2, 1, 18, 4>}, {transform_indices = @transform_2, window_bounds = array<i64: 2, 1, 18, 4>}, {pipeline_mode = #tpu.pipeline_mode<synchronous>, transform_indices = @transform_3, window_bounds = array<i64: 9, 4, 128>}, {transform_indices = @transform_4, window_bounds = array<i64: 1, 128>}, {transform_indices = @transform_5, window_bounds = array<i64: 1, 128>}]} {
    %c0_i32 = arith.constant 0 : i32
    %0 = arith.cmpi eq, %arg1, %c0_i32 : i32
    %1 = arith.extui %0 : i1 to i32
    %c0_i32_0 = arith.constant 0 : i32
    %2 = arith.cmpi ne, %1, %c0_i32_0 : i32
    scf.if %2 {
      %cst_50 = arith.constant 0.000000e+00 : f32
      %76 = vector.broadcast %cst_50 : f32 to vector<1x128xf32>
      %c0_51 = arith.constant 0 : index
      %c0_52 = arith.constant 0 : index
      %77 = vector.load %arg8[%c0_51, %c0_52] : memref<1x128xf32, #tpu.memory_space<vmem>>, vector<1x128xf32>
      tpu.vector_store %arg8[%c0_51, %c0_52], %76 {strides = array<i32>} : memref<1x128xf32, #tpu.memory_space<vmem>>, vector<1x128xf32>,
      %cst_53 = arith.constant 0.000000e+00 : f32
      %78 = vector.broadcast %cst_53 : f32 to vector<1x128xf32>
      %c0_54 = arith.constant 0 : index
      %c0_55 = arith.constant 0 : index
      %79 = vector.load %arg9[%c0_54, %c0_55] : memref<1x128xf32, #tpu.memory_space<vmem>>, vector<1x128xf32>
      tpu.vector_store %arg9[%c0_54, %c0_55], %78 {strides = array<i32>} : memref<1x128xf32, #tpu.memory_space<vmem>>, vector<1x128xf32>,
    } else {
    }
    %c0 = arith.constant 0 : index
    %c0_1 = arith.constant 0 : index
    %c0_2 = arith.constant 0 : index
    %c0_3 = arith.constant 0 : index
    %3 = vector.load %arg2[%c0, %c0_1, %c0_2, %c0_3] : memref<2x1x18x4xbf16, #tpu.memory_space<vmem>>, vector<2x1x18x4xbf16>
    %4 = vector.shape_cast %3 : vector<2x1x18x4xbf16> to vector<2x18x4xbf16>
    %5 = vector.extract_strided_slice %4 {offsets = [0, 0, 0], sizes = [2, 16, 4], strides = [1, 1, 1]} : vector<2x18x4xbf16> to vector<2x16x4xbf16>
    %6 = vector.shape_cast %5 : vector<2x16x4xbf16> to vector<32x4xbf16>
    %c0_4 = arith.constant 0 : index
    %c0_5 = arith.constant 0 : index
    %c0_6 = arith.constant 0 : index
    %7 = vector.load %arg5[%c0_4, %c0_5, %c0_6] : memref<9x4x128xbf16, #tpu.memory_space<vmem>>, vector<1x4x128xbf16>
    %8 = vector.shape_cast %7 : vector<1x4x128xbf16> to vector<4x128xbf16>
    %cst = arith.constant dense<0.000000e+00> : vector<32x128xf32>
    %9 = tpu.matmul %6, %8, %cst {dimension_numbers = #tpu.dot_dimension_numbers<[1], [0], [0], [1], [0, 0, 1, 1], [], []>} : vector<32x4xbf16>, vector<4x128xbf16>, vector<32x128xf32> -> vector<32x128xf32>
    %10 = vector.extract_strided_slice %4 {offsets = [0, 1, 0], sizes = [2, 16, 4], strides = [1, 1, 1]} : vector<2x18x4xbf16> to vector<2x16x4xbf16>
    %11 = vector.shape_cast %10 : vector<2x16x4xbf16> to vector<32x4xbf16>
    %c1 = arith.constant 1 : index
    %c0_7 = arith.constant 0 : index
    %c0_8 = arith.constant 0 : index
    %12 = vector.load %arg5[%c1, %c0_7, %c0_8] : memref<9x4x128xbf16, #tpu.memory_space<vmem>>, vector<1x4x128xbf16>
    %13 = vector.shape_cast %12 : vector<1x4x128xbf16> to vector<4x128xbf16>
    %cst_9 = arith.constant dense<0.000000e+00> : vector<32x128xf32>
    %14 = tpu.matmul %11, %13, %cst_9 {dimension_numbers = #tpu.dot_dimension_numbers<[1], [0], [0], [1], [0, 0, 1, 1], [], []>} : vector<32x4xbf16>, vector<4x128xbf16>, vector<32x128xf32> -> vector<32x128xf32>
    %15 = arith.addf %9, %14 : vector<32x128xf32>
    %16 = vector.extract_strided_slice %4 {offsets = [0, 2, 0], sizes = [2, 16, 4], strides = [1, 1, 1]} : vector<2x18x4xbf16> to vector<2x16x4xbf16>
    %17 = vector.shape_cast %16 : vector<2x16x4xbf16> to vector<32x4xbf16>
    %c2 = arith.constant 2 : index
    %c0_10 = arith.constant 0 : index
    %c0_11 = arith.constant 0 : index
    %18 = vector.load %arg5[%c2, %c0_10, %c0_11] : memref<9x4x128xbf16, #tpu.memory_space<vmem>>, vector<1x4x128xbf16>
    %19 = vector.shape_cast %18 : vector<1x4x128xbf16> to vector<4x128xbf16>
    %cst_12 = arith.constant dense<0.000000e+00> : vector<32x128xf32>
    %20 = tpu.matmul %17, %19, %cst_12 {dimension_numbers = #tpu.dot_dimension_numbers<[1], [0], [0], [1], [0, 0, 1, 1], [], []>} : vector<32x4xbf16>, vector<4x128xbf16>, vector<32x128xf32> -> vector<32x128xf32>
    %21 = arith.addf %15, %20 : vector<32x128xf32>
    %c0_13 = arith.constant 0 : index
    %c0_14 = arith.constant 0 : index
    %c0_15 = arith.constant 0 : index
    %c0_16 = arith.constant 0 : index
    %22 = vector.load %arg3[%c0_13, %c0_14, %c0_15, %c0_16] : memref<2x1x18x4xbf16, #tpu.memory_space<vmem>>, vector<2x1x18x4xbf16>
    %23 = vector.shape_cast %22 : vector<2x1x18x4xbf16> to vector<2x18x4xbf16>
    %24 = vector.extract_strided_slice %23 {offsets = [0, 0, 0], sizes = [2, 16, 4], strides = [1, 1, 1]} : vector<2x18x4xbf16> to vector<2x16x4xbf16>
    %25 = vector.shape_cast %24 : vector<2x16x4xbf16> to vector<32x4xbf16>
    %c3 = arith.constant 3 : index
    %c0_17 = arith.constant 0 : index
    %c0_18 = arith.constant 0 : index
    %26 = vector.load %arg5[%c3, %c0_17, %c0_18] : memref<9x4x128xbf16, #tpu.memory_space<vmem>>, vector<1x4x128xbf16>
    %27 = vector.shape_cast %26 : vector<1x4x128xbf16> to vector<4x128xbf16>
    %cst_19 = arith.constant dense<0.000000e+00> : vector<32x128xf32>
    %28 = tpu.matmul %25, %27, %cst_19 {dimension_numbers = #tpu.dot_dimension_numbers<[1], [0], [0], [1], [0, 0, 1, 1], [], []>} : vector<32x4xbf16>, vector<4x128xbf16>, vector<32x128xf32> -> vector<32x128xf32>
    %29 = arith.addf %21, %28 : vector<32x128xf32>
    %30 = vector.extract_strided_slice %23 {offsets = [0, 1, 0], sizes = [2, 16, 4], strides = [1, 1, 1]} : vector<2x18x4xbf16> to vector<2x16x4xbf16>
    %31 = vector.shape_cast %30 : vector<2x16x4xbf16> to vector<32x4xbf16>
    %c4 = arith.constant 4 : index
    %c0_20 = arith.constant 0 : index
    %c0_21 = arith.constant 0 : index
    %32 = vector.load %arg5[%c4, %c0_20, %c0_21] : memref<9x4x128xbf16, #tpu.memory_space<vmem>>, vector<1x4x128xbf16>
    %33 = vector.shape_cast %32 : vector<1x4x128xbf16> to vector<4x128xbf16>
    %cst_22 = arith.constant dense<0.000000e+00> : vector<32x128xf32>
    %34 = tpu.matmul %31, %33, %cst_22 {dimension_numbers = #tpu.dot_dimension_numbers<[1], [0], [0], [1], [0, 0, 1, 1], [], []>} : vector<32x4xbf16>, vector<4x128xbf16>, vector<32x128xf32> -> vector<32x128xf32>
    %35 = arith.addf %29, %34 : vector<32x128xf32>
    %36 = vector.extract_strided_slice %23 {offsets = [0, 2, 0], sizes = [2, 16, 4], strides = [1, 1, 1]} : vector<2x18x4xbf16> to vector<2x16x4xbf16>
    %37 = vector.shape_cast %36 : vector<2x16x4xbf16> to vector<32x4xbf16>
    %c5 = arith.constant 5 : index
    %c0_23 = arith.constant 0 : index
    %c0_24 = arith.constant 0 : index
    %38 = vector.load %arg5[%c5, %c0_23, %c0_24] : memref<9x4x128xbf16, #tpu.memory_space<vmem>>, vector<1x4x128xbf16>
    %39 = vector.shape_cast %38 : vector<1x4x128xbf16> to vector<4x128xbf16>
    %cst_25 = arith.constant dense<0.000000e+00> : vector<32x128xf32>
    %40 = tpu.matmul %37, %39, %cst_25 {dimension_numbers = #tpu.dot_dimension_numbers<[1], [0], [0], [1], [0, 0, 1, 1], [], []>} : vector<32x4xbf16>, vector<4x128xbf16>, vector<32x128xf32> -> vector<32x128xf32>
    %41 = arith.addf %35, %40 : vector<32x128xf32>
    %c0_26 = arith.constant 0 : index
    %c0_27 = arith.constant 0 : index
    %c0_28 = arith.constant 0 : index
    %c0_29 = arith.constant 0 : index
    %42 = vector.load %arg4[%c0_26, %c0_27, %c0_28, %c0_29] : memref<2x1x18x4xbf16, #tpu.memory_space<vmem>>, vector<2x1x18x4xbf16>
    %43 = vector.shape_cast %42 : vector<2x1x18x4xbf16> to vector<2x18x4xbf16>
    %44 = vector.extract_strided_slice %43 {offsets = [0, 0, 0], sizes = [2, 16, 4], strides = [1, 1, 1]} : vector<2x18x4xbf16> to vector<2x16x4xbf16>
    %45 = vector.shape_cast %44 : vector<2x16x4xbf16> to vector<32x4xbf16>
    %c6 = arith.constant 6 : index
    %c0_30 = arith.constant 0 : index
    %c0_31 = arith.constant 0 : index
    %46 = vector.load %arg5[%c6, %c0_30, %c0_31] : memref<9x4x128xbf16, #tpu.memory_space<vmem>>, vector<1x4x128xbf16>
    %47 = vector.shape_cast %46 : vector<1x4x128xbf16> to vector<4x128xbf16>
    %cst_32 = arith.constant dense<0.000000e+00> : vector<32x128xf32>
    %48 = tpu.matmul %45, %47, %cst_32 {dimension_numbers = #tpu.dot_dimension_numbers<[1], [0], [0], [1], [0, 0, 1, 1], [], []>} : vector<32x4xbf16>, vector<4x128xbf16>, vector<32x128xf32> -> vector<32x128xf32>
    %49 = arith.addf %41, %48 : vector<32x128xf32>
    %50 = vector.extract_strided_slice %43 {offsets = [0, 1, 0], sizes = [2, 16, 4], strides = [1, 1, 1]} : vector<2x18x4xbf16> to vector<2x16x4xbf16>
    %51 = vector.shape_cast %50 : vector<2x16x4xbf16> to vector<32x4xbf16>
    %c7 = arith.constant 7 : index
    %c0_33 = arith.constant 0 : index
    %c0_34 = arith.constant 0 : index
    %52 = vector.load %arg5[%c7, %c0_33, %c0_34] : memref<9x4x128xbf16, #tpu.memory_space<vmem>>, vector<1x4x128xbf16>
    %53 = vector.shape_cast %52 : vector<1x4x128xbf16> to vector<4x128xbf16>
    %cst_35 = arith.constant dense<0.000000e+00> : vector<32x128xf32>
    %54 = tpu.matmul %51, %53, %cst_35 {dimension_numbers = #tpu.dot_dimension_numbers<[1], [0], [0], [1], [0, 0, 1, 1], [], []>} : vector<32x4xbf16>, vector<4x128xbf16>, vector<32x128xf32> -> vector<32x128xf32>
    %55 = arith.addf %49, %54 : vector<32x128xf32>
    %56 = vector.extract_strided_slice %43 {offsets = [0, 2, 0], sizes = [2, 16, 4], strides = [1, 1, 1]} : vector<2x18x4xbf16> to vector<2x16x4xbf16>
    %57 = vector.shape_cast %56 : vector<2x16x4xbf16> to vector<32x4xbf16>
    %c8 = arith.constant 8 : index
    %c0_36 = arith.constant 0 : index
    %c0_37 = arith.constant 0 : index
    %58 = vector.load %arg5[%c8, %c0_36, %c0_37] : memref<9x4x128xbf16, #tpu.memory_space<vmem>>, vector<1x4x128xbf16>
    %59 = vector.shape_cast %58 : vector<1x4x128xbf16> to vector<4x128xbf16>
    %cst_38 = arith.constant dense<0.000000e+00> : vector<32x128xf32>
    %60 = tpu.matmul %57, %59, %cst_38 {dimension_numbers = #tpu.dot_dimension_numbers<[1], [0], [0], [1], [0, 0, 1, 1], [], []>} : vector<32x4xbf16>, vector<4x128xbf16>, vector<32x128xf32> -> vector<32x128xf32>
    %61 = arith.addf %55, %60 : vector<32x128xf32>
    %c0_39 = arith.constant 0 : index
    %c0_40 = arith.constant 0 : index
    %62 = vector.load %arg8[%c0_39, %c0_40] : memref<1x128xf32, #tpu.memory_space<vmem>>, vector<1x128xf32>
    %cst_41 = arith.constant dense<0.000000e+00> : vector<128xf32>
    %63 = vector.multi_reduction <add>, %61, %cst_41 [0] : vector<32x128xf32> to vector<128xf32>
    %64 = vector.shape_cast %63 : vector<128xf32> to vector<1x128xf32>
    %65 = arith.addf %62, %64 : vector<1x128xf32>
    %c0_42 = arith.constant 0 : index
    %c0_43 = arith.constant 0 : index
    %66 = vector.load %arg8[%c0_42, %c0_43] : memref<1x128xf32, #tpu.memory_space<vmem>>, vector<1x128xf32>
    tpu.vector_store %arg8[%c0_42, %c0_43], %65 {strides = array<i32>} : memref<1x128xf32, #tpu.memory_space<vmem>>, vector<1x128xf32>,
    %c0_44 = arith.constant 0 : index
    %c0_45 = arith.constant 0 : index
    %67 = vector.load %arg9[%c0_44, %c0_45] : memref<1x128xf32, #tpu.memory_space<vmem>>, vector<1x128xf32>
    %68 = arith.mulf %61, %61 : vector<32x128xf32>
    %cst_46 = arith.constant dense<0.000000e+00> : vector<128xf32>
    %69 = vector.multi_reduction <add>, %68, %cst_46 [0] : vector<32x128xf32> to vector<128xf32>
    %70 = vector.shape_cast %69 : vector<128xf32> to vector<1x128xf32>
    %71 = arith.addf %67, %70 : vector<1x128xf32>
    %c0_47 = arith.constant 0 : index
    %c0_48 = arith.constant 0 : index
    %72 = vector.load %arg9[%c0_47, %c0_48] : memref<1x128xf32, #tpu.memory_space<vmem>>, vector<1x128xf32>
    tpu.vector_store %arg9[%c0_47, %c0_48], %71 {strides = array<i32>} : memref<1x128xf32, #tpu.memory_space<vmem>>, vector<1x128xf32>,
    %c7_i32 = arith.constant 7 : i32
    %73 = arith.cmpi eq, %arg1, %c7_i32 : i32
    %74 = arith.extui %73 : i1 to i32
    %c0_i32_49 = arith.constant 0 : i32
    %75 = arith.cmpi ne, %74, %c0_i32_49 : i32
    scf.if %75 {
      %c0_50 = arith.constant 0 : index
      %c0_51 = arith.constant 0 : index
      %76 = vector.load %arg8[%c0_50, %c0_51] : memref<1x128xf32, #tpu.memory_space<vmem>>, vector<1x128xf32>
      %c0_52 = arith.constant 0 : index
      %c0_53 = arith.constant 0 : index
      %77 = vector.load %arg6[%c0_52, %c0_53] : memref<1x128xf32, #tpu.memory_space<vmem>>, vector<1x128xf32>
      tpu.vector_store %arg6[%c0_52, %c0_53], %76 {strides = array<i32>} : memref<1x128xf32, #tpu.memory_space<vmem>>, vector<1x128xf32>,
      %c0_54 = arith.constant 0 : index
      %c0_55 = arith.constant 0 : index
      %78 = vector.load %arg9[%c0_54, %c0_55] : memref<1x128xf32, #tpu.memory_space<vmem>>, vector<1x128xf32>
      %c0_56 = arith.constant 0 : index
      %c0_57 = arith.constant 0 : index
      %79 = vector.load %arg7[%c0_56, %c0_57] : memref<1x128xf32, #tpu.memory_space<vmem>>, vector<1x128xf32>
      tpu.vector_store %arg7[%c0_56, %c0_57], %78 {strides = array<i32>} : memref<1x128xf32, #tpu.memory_space<vmem>>, vector<1x128xf32>,
    } else {
    }
    return
  }
  func.func @transform_0(%arg0: i32, %arg1: i32) -> (i32, i32, i32, i32) {
    %c8_i32 = arith.constant 8 : i32
    %0 = arith.muli %arg0, %c8_i32 : i32
    %1 = arith.addi %0, %arg1 : i32
    %c0_i32 = arith.constant 0 : i32
    %2 = arith.addi %1, %c0_i32 : i32
    %c0_i32_0 = arith.constant 0 : i32
    %c0_i32_1 = arith.constant 0 : i32
    %c0_i32_2 = arith.constant 0 : i32
    %c0_i32_3 = arith.constant 0 : i32
    return %c0_i32_0, %2, %c0_i32_1, %c0_i32_2 : i32, i32, i32, i32
  }
  func.func @transform_1(%arg0: i32, %arg1: i32) -> (i32, i32, i32, i32) {
    %c8_i32 = arith.constant 8 : i32
    %0 = arith.muli %arg0, %c8_i32 : i32
    %1 = arith.addi %0, %arg1 : i32
    %c1_i32 = arith.constant 1 : i32
    %2 = arith.addi %1, %c1_i32 : i32
    %c0_i32 = arith.constant 0 : i32
    %c0_i32_0 = arith.constant 0 : i32
    %c0_i32_1 = arith.constant 0 : i32
    %c0_i32_2 = arith.constant 0 : i32
    return %c0_i32, %2, %c0_i32_0, %c0_i32_1 : i32, i32, i32, i32
  }
  func.func @transform_2(%arg0: i32, %arg1: i32) -> (i32, i32, i32, i32) {
    %c8_i32 = arith.constant 8 : i32
    %0 = arith.muli %arg0, %c8_i32 : i32
    %1 = arith.addi %0, %arg1 : i32
    %c2_i32 = arith.constant 2 : i32
    %2 = arith.addi %1, %c2_i32 : i32
    %c0_i32 = arith.constant 0 : i32
    %c0_i32_0 = arith.constant 0 : i32
    %c0_i32_1 = arith.constant 0 : i32
    %c0_i32_2 = arith.constant 0 : i32
    return %c0_i32, %2, %c0_i32_0, %c0_i32_1 : i32, i32, i32, i32
  }
  func.func @transform_3(%arg0: i32, %arg1: i32) -> (i32, i32, i32) {
    %c0_i32 = arith.constant 0 : i32
    %c0_i32_0 = arith.constant 0 : i32
    %c0_i32_1 = arith.constant 0 : i32
    %c0_i32_2 = arith.constant 0 : i32
    return %c0_i32, %c0_i32_0, %c0_i32_1 : i32, i32, i32
  }
  func.func @transform_4(%arg0: i32, %arg1: i32) -> (i32, i32) {
    %c0_i32 = arith.constant 0 : i32
    %c0_i32_0 = arith.constant 0 : i32
    return %c0_i32, %arg0 : i32, i32
  }
  func.func @transform_5(%arg0: i32, %arg1: i32) -> (i32, i32) {
    %c0_i32 = arith.constant 0 : i32
    %c0_i32_0 = arith.constant 0 : i32
    return %c0_i32, %arg0 : i32, i32
  }
}

</mosaic_0001>

<bundles_post_ra>
// kernel: tpu_custom_call.1
= control target key start
LH: loop header
LB: loop body
LE: loop exit
PB: predicated region body
PF: predicated region fallthrough
CT: control target
= control target key end

     0   :  { %s2583_s0 = inlined_call_operand.vmem [shape: bf16[2,18,18,4], index: 0, kind: input, shape index: {}]   ;;  %s2584_s1 = inlined_call_operand.vmem [shape: bf16[2,18,18,4], index: 1, kind: input, shape index: {}]   ;;  %s2585_s2 = inlined_call_operand.vmem [shape: bf16[2,18,18,4], index: 2, kind: input, shape index: {}]   ;;  %s2586_s3 = inlined_call_operand.vmem [shape: bf16[9,4,128], index: 3, kind: input, shape index: {}]   ;;  %s2587_s4 = inlined_call_operand.hbm [shape: f32[1,256], index: 4, kind: output, shape index: {0}]   ;;  %s2588_s5 = inlined_call_operand.hbm [shape: f32[1,256], index: 5, kind: output, shape index: {1}]  }
   0x1   :  { %2603 = sst [smem:[#allocation21_spill]] %s2583_s0 }
   0x2   :  { %2604 = sst [smem:[#allocation22_spill]] %s2584_s1 }
   0x3   :  { %2605 = sst [smem:[#allocation23_spill]] %s2585_s2 }
   0x4   :  { %2606 = sst [smem:[#allocation24_spill]] %s2586_s3 }
   0x5   :  { %2607 = sst [smem:[#allocation25_spill]] %s2587_s4 }
   0x6   :  { %2608 = sst [smem:[#allocation26_spill]] %s2588_s5 }
   0x7   :  { %11 = vsyncpa [#allocation8], 0 }
   0x8   :  { %13 = vsyncpa [#allocation8 + $0x1], 0 }
   0x9   :  { %14 = vsyncpa [#allocation10], 0 }
   0xa   :  { %16 = vsyncpa [#allocation10 + $0x1], 0  ;;  %s2092_s18 = smov 0   ;;  %s2094_s19 = smov 0  }
   0xb   :  { %s2096_s20 = smov 0   ;;  %s2098_s21 = smov 0  }
   0xc   :  { %s2100_s22 = smov 0   ;;  %s2102_s23 = smov 0  }
   0xd   :  { %s2104_s24 = smov 0   ;;  %s2106_s25 = smov 0  }
   0xe   :  { %s2108_s26 = smov 0   ;;  %s2110_s27 = smov 0  }
   0xf   :  { %s2112_s28 = smov 0   ;;  %s2114_s29 = smov 0  }
  0x10   :  { %s2116_s30 = smov 0   ;;  %s2118_s6 = smov 0  }
  0x11 LB: > { %2609 = sst [smem:[#allocation13_spill]] %s2025_s23  ;;  %s31_s9 = sadd.s32 1, %s2049_s29  ;;  %s2057_s6 = sphi %s2118_s6, %s22_s6   ;;  %s2053_s30 = sphi %s2116_s30, %s2660_s30   ;;  %s2049_s29 = sphi %s2114_s29, %s2646_s29   ;;  %s2045_s28 = sphi %s2112_s28, %s2659_s28   ;;  %s2041_s27 = sphi %s2110_s27, %s2658_s27   ;;  %s2037_s26 = sphi %s2108_s26, %s2657_s26   ;;  %s2033_s25 = sphi %s2106_s25, %s2656_s25   ;;  %s2029_s24 = sphi %s2104_s24, %s2655_s24   ;;  %s2025_s23 = sphi %s2102_s23, %s2654_s23   ;;  %s2021_s22 = sphi %s2100_s22, %s2653_s22   ;;  %s2017_s21 = sphi %s2098_s21, %s2652_s21   ;;  %s2013_s20 = sphi %s2096_s20, %s2651_s20   ;;  %s2009_s19 = sphi %s2094_s19, %s2650_s19   ;;  %s2005_s18 = sphi %s2092_s18, %s2649_s18  }
  0x12   : > { %2610 = sst [smem:[#allocation14_spill]] %s2033_s25  ;;  %s34_s10 = sadd.s32 1, %s2053_s30 }
  0x13   : > { %2611 = sst [smem:[#allocation15_spill]] %s2041_s27  ;;  %p32_p0 = scmp.ge.s32.totalorder %s31_s9, 8 }
  0x14   : > { %2612 = sst [smem:[#allocation16_spill]] %s2045_s28  ;;  %s1578_s11 = sshll.u32 %s2053_s30, 3 }
  0x15   : > { %2613 = sst [smem:[#allocation17_spill]] %s2049_s29  ;;  %s2168_s12 = sadd.s32 %s2049_s29, %s1578_s11 }
  0x16   : > { %2614 = sst [smem:[#allocation18_spill]] %s2053_s30  ;;  %s45_s13 = sadd.s32 1, %s2037_s26 }
  0x17   : > { %s2662_s9 = smov (%p32_p0, %s31_s9), 0  ;;  %s2664_s10 = smov (!%p32_p0, %s34_s10), %s2053_s30 }
  0x18   : > { %2615 = sst [smem:[#allocation19_spill]] %s2662_s9  ;;  %p52_p1 = scmp.ne.s32.totalorder %s2037_s26, %s2033_s25 }
  0x19   : > { %p53_p2 = scmp.eq.s32.totalorder %s2057_s6, 0  ;;  %p36_p3 = scmp.ge.s32.totalorder %s2664_s10, 2 }
  0x1a   : > { %s70_s14 = sadd.s32 1, %s2168_s12  ;;  %s77_s16 = sadd.s32 1, %s2029_s24 }
  0x1b   : > { %p2180_p4 = por %p53_p2, %p52_p1  ;;  %s2666_s10 = smov (%p36_p3, %s2664_s10), 0 }
  0x1c   : > { %2617 = sst [smem:[#allocation20_spill]] %s2666_s10  ;;  %p84_p5 = scmp.ne.s32.totalorder %s2029_s24, %s2025_s23 }
  0x1d   : > { %s102_s17 = sadd.s32 2, %s2168_s12  ;;  %s1579_s11 = sshll.u32 %s2666_s10, 3 }
  0x1e   : > { %s109_s8 = sadd.s32 1, %s2021_s22  ;;  %s41_s7 = sadd.s32 %s1579_s11, %s2662_s9 }
  0x1f   : > { %p2195_p6 = por %p84_p5, %p53_p2  ;;  %s42_s5 = ssub.s32 %s2168_s12, %s41_s7 }
  0x20   : > { %s73_s4 = sadd.s32 1, %s41_s7  ;;  %p43_p7 = scmp.eq.s32.totalorder %s42_s5, 0 }
  0x21   : > { %s74_s28 = ssub.s32 %s70_s14, %s73_s4  ;;  %s105_s11 = sadd.s32 2, %s41_s7 }
  0x22   : > { %p75_p8 = scmp.eq.s32.totalorder %s74_s28, 0  ;;  %s106_s27 = ssub.s32 %s102_s17, %s105_s11 }
  0x23   : > { %s2201_s9 = scalar_select %p43_p7, %s2037_s26, %s45_s13  }
  0x24   : > { %s2204_s3 = scalar_select %p75_p8, %s2029_s24, %s77_s16  }
  0x25   : > { %p116_p9 = scmp.ne.s32.totalorder %s2021_s22, %s2017_s21  ;;  %p107_p10 = scmp.eq.s32.totalorder %s106_s27, 0 }
  0x26   : > { %s153_s23 = ssub.s32 %s2053_s30, %s2666_s10  ;;  %s156_s5 = sadd.s32 1, %s2013_s20 }
  0x27   : > { %p2212_p11 = por %p116_p9, %p53_p2  ;;  %p154_p12 = scmp.eq.s32.totalorder %s153_s23, 0 }
  0x28   : > { %s2217_s4 = scalar_select %p107_p10, %s2021_s22, %s109_s8  }
  0x29   : > { %p166_p13 = scmp.ne.s32.totalorder %s2013_s20, %s2009_s19  ;;  %s2620_s7 = sadd.s32 4294967295, %s2057_s6  }
  0x2a   : > { %s2223_s28 = scalar_select %p154_p12, %s2013_s20, %s156_s5  }
  0x2b   : > { %p167_p0 = scmp.eq.s32.totalorder %s2620_s7, 15  ;;  %p172_p1 = scmp.ne.s32.totalorder %s2009_s19, %s2005_s18 }
  0x2c   : > { %s2621_s13 = sadd.s32 4294967294, %s2057_s6   ;;  %p1585_p7 = scmp.ge.s32.totalorder %s2057_s6, 16 }
  0x2d   : > { %p173_p3 = scmp.eq.s32.totalorder %s2621_s13, 15  ;;  %p2231_p5 = por %p167_p0, %p166_p13 }
  0x2e   : > { %218 = sbr.rel (%p1585_p7) target bundleno = 84 (0x54), region = 20 }
  0x2f   : > { %p2235_p2 = por %p173_p3, %p172_p1 }
  0x33   : > { %221 = sbr.rel (!%p2180_p4) target bundleno = 62 (0x3e), region = 24  ;;  %s223_s23 = sand.u32 (%p2180_p4), 1, %s2037_s26  }
  0x34   : > { %s1750_s8 = smul.u32 (%p2180_p4), 12, %s2168_s12  ;;  %s2624_s0 = sld [smem:[#allocation21_spill]] (%p2180_p4) }
  0x35   : > { %s1749_s16 = smul.u32 (%p2180_p4), 24, %s223_s23 }
  0x37   : > { %s225_s7 = scalar_lea.vmem (%p2180_p4), [#allocation4], %s1749_s16 }
  0x3a   : > { %s230_s5 = scalar_lea.vmem %s2624_s0, %s1750_s8 }
  0x3b   : > { %v247_v0 = vld [vmem:[%s230_s5] sm:$0xff]   ;;  %v251_v1 = vld [vmem:[%s230_s5 + $0x8] sm:$0xf]  ;;  %v253_v2 = vld [vmem:[%s230_s5 + $0xd8] sm:$0xff]  }
  0x3c   : > { %248 = vst [vmem:[%s225_s7] sm:$0xff] %v247_v0   ;;  %252 = vst [vmem:[%s225_s7 + $0x8] sm:$0xf] %v251_v1  ;;  %v257_v3 = vld [vmem:[%s230_s5 + $0xe0] sm:$0xf] }
  0x3d   : > { %254 = vst [vmem:[%s225_s7 + $0xc] sm:$0xff] %v253_v2   ;;  %258 = vst [vmem:[%s225_s7 + $0x14] sm:$0xf] %v257_v3 }
  0x3e PF: > { %294 = sbr.rel (!%p2195_p6) target bundleno = 73 (0x49), region = 65  ;;  %s296_s15 = sand.u32 (%p2195_p6), 1, %s2029_s24  }
  0x3f   : > { %s1473_s13 = smul.u32 (%p2195_p6), 12, %s2168_s12  ;;  %s2625_s1 = sld [smem:[#allocation22_spill]] (%p2195_p6) }
  0x40   : > { %s1751_s23 = smul.u32 (%p2195_p6), 24, %s296_s15 }
  0x42   : > { %s298_s16 = scalar_lea.vmem (%p2195_p6), [#allocation5], %s1751_s23 }
  0x45   : > { %s1474_s11 = scalar_lea.vmem %s2625_s1, %s1473_s13 }
  0x46   : > { %v1589_v4 = vld [vmem:[%s1474_s11 + $0xc] sm:$0xff]   ;;  %v1591_v5 = vld [vmem:[%s1474_s11 + $0x14] sm:$0xf]  ;;  %v1592_v6 = vld [vmem:[%s1474_s11 + $0xe4] sm:$0xff]  }
  0x47   : > { %322 = vst [vmem:[%s298_s16] sm:$0xff] %v1589_v4   ;;  %326 = vst [vmem:[%s298_s16 + $0x8] sm:$0xf] %v1591_v5  ;;  %v1594_v7 = vld [vmem:[%s1474_s11 + $0xec] sm:$0xf] }
  0x48   : > { %328 = vst [vmem:[%s298_s16 + $0xc] sm:$0xff] %v1592_v6   ;;  %332 = vst [vmem:[%s298_s16 + $0x14] sm:$0xf] %v1594_v7 }
  0x49 PF: > { %368 = sbr.rel (!%p2212_p11) target bundleno = 84 (0x54), region = 106  ;;  %s370_s29 = sand.u32 (%p2212_p11), 1, %s2021_s22  }
  0x4a   : > { %s1480_s5 = smul.u32 (%p2212_p11), 12, %s2168_s12  ;;  %s2626_s2 = sld [smem:[#allocation23_spill]] (%p2212_p11) }
  0x4b   : > { %s1752_s7 = smul.u32 (%p2212_p11), 24, %s370_s29 }
  0x4d   : > { %s372_s23 = scalar_lea.vmem (%p2212_p11), [#allocation6], %s1752_s7 }
  0x50   : > { %s1481_s17 = scalar_lea.vmem %s2626_s2, %s1480_s5 }
  0x51   : > { %v1596_v8 = vld [vmem:[%s1481_s17 + $0x18] sm:$0xff]   ;;  %v1598_v9 = vld [vmem:[%s1481_s17 + $0x20] sm:$0xf]  ;;  %v1599_v10 = vld [vmem:[%s1481_s17 + $0xf0] sm:$0xff]  }
  0x52   : > { %396 = vst [vmem:[%s372_s23] sm:$0xff] %v1596_v8   ;;  %400 = vst [vmem:[%s372_s23 + $0x8] sm:$0xf] %v1598_v9  ;;  %v1601_v11 = vld [vmem:[%s1481_s17 + $0xf8] sm:$0xf] }
  0x53   : > { %402 = vst [vmem:[%s372_s23 + $0xc] sm:$0xff] %v1599_v10   ;;  %406 = vst [vmem:[%s372_s23 + $0x14] sm:$0xf] %v1601_v11 }
  0x54 PF: > { %p1602_p4 = scmp.ge.s32.totalorder %s2057_s6, 1  ;;  %p441_p6 = scmp.lt.s32.totalorder %s2057_s6, 17 }
  0x56   : > { %p442_p8 = pnand %p1602_p4, %p441_p6 }
  0x57   : > { %s2627_s25 = sld [smem:[#allocation14_spill]] (!%p442_p8)  ;;  %s462_s29 = sand.u32 (!%p442_p8), 1, %s2017_s21  }
  0x58   : > { %445 = sbr.rel (%p442_p8) target bundleno = 437 (0x1b5), region = 147  ;;  %s2628_s12 = sld [smem:[#allocation13_spill]] (!%p442_p8) }
  0x59   : > { %s2267_s7 = sand.u32 (!%p442_p8), 1, %s2009_s19   ;;  %s1755_s15 = smul.u32 (!%p442_p8), 24, %s462_s29 }
  0x5a   : > { %s493_s0 = scalar_lea.vmem (!%p442_p8), [#allocation7], %s2267_s7  ;;  %s2597_s1 = scalar_lea.vmem (!%p442_p8), [#allocation9], %s2267_s7 }
  0x5b   : > { %s2273_s23 = scalar_lea.vmem (!%p442_p8), [#allocation6], %s1755_s15  ;;  %s2629_s2 = sld [smem:[#allocation15_spill]] (!%p442_p8) }
  0x5d   : > { %s448_s8 = sand.u32 1, %s2627_s25  }
  0x5e   : > { %s455_s11 = sand.u32 1, %s2628_s12   ;;  %s1753_s16 = smul.u32 24, %s448_s8 }
  0x5f   : > { %s1754_s5 = smul.u32 24, %s455_s11 }
  0x60   : > { %s2269_s13 = scalar_lea.vmem [#allocation4], %s1753_s16 }
  0x61   : > { %s2271_s17 = scalar_lea.vmem [#allocation5], %s1754_s5  ;;  %p1603_p9 = scmp.ne.s32.totalorder %s2629_s2, 0 }
  0x63   : > { %512 = sbr.rel (%p1603_p9) target bundleno = 106 (0x6a), region = 163 }
  0x68   : > { %v2059_v12 = vmov 0.0  }
  0x69   : > { %513 = vst [vmem:[#allocation2] sm:$0x1] %v2059_v12  ;;  %514 = vst [vmem:[#allocation3] sm:$0x1] %v2059_v12 }
  0x6a PF: > { %s2630_s12 = sld [smem:[#allocation24_spill]]  ;;  %vm588_vm0 = vcmask 1041408   ;;  %vm581_vm1 = vcmask 31744   ;;  %v2289_v17 = vld [vmem:[%s2269_s13] sm:$0xf]  ;;  %vm711_vm5 = vcmask 1042432  }
  0x6b   : > { %v2292_v18 = vld [vmem:[%s2269_s13 + $0x4] sm:$0xf]  ;;  %v2295_v19 = vld [vmem:[%s2269_s13 + $0x8] sm:$0x1]  ;;  %vm522_vm2 = vsmask.f32 3328 }
  0x6c   : > { %vm523_vm3 = vsmask.f32 7440  ;;  %v1609_v20 = vcombine.low %v2289_v17, %v2292_v18  ;;  %v526_v21 = vshrl.u32 %v2289_v17, 16  ;;  %v529_v22 = vshll.u32 %v2289_v17, 16  ;;  %v2311_v28 = vld [vmem:[%s2269_s13 + $0xc] sm:$0xf] }
  0x6d   : > { %v535_v23 = vshll.u32 %v2292_v18, 16  ;;  %v539_v24 = vshrl.u32 %v2292_v18, 16  ;;  %v545_v26 = vshll.u32 %v2295_v19, 16  ;;  %v719_v27 = vrot.slane %v2295_v19, 5  ;;  %v2314_v29 = vld [vmem:[%s2269_s13 + $0x10] sm:$0xf]  ;;  %vm2330_vm4 = vmor %vm522_vm2, %vm523_vm3 }
  0x6e   : > { %1694 = vmatprep.mubr.msk.bf16.mxu1 %vm581_vm1, %v1609_v20  ;;  %v528_v30 = vrot.slane %v526_v21, 4  ;;  %v531_v31 = vrot.slane %v529_v22, 5  ;;  %v2317_v34 = vld [vmem:[%s2269_s13 + $0x14] sm:$0x1]  ;;  %v550_v36 = vshrl.u32 %v2311_v28, 16  ;;  %v553_v37 = vshll.u32 %v2311_v28, 16 }
  0x6f   : > { %v537_v32 = vrot.slane %v535_v23, 5  ;;  %v541_v33 = vrot.slane %v539_v24, 4  ;;  %v547_v35 = vrot.slane %v545_v26, 5  ;;  %v559_v38 = vshll.u32 %v2314_v29, 16  ;;  %v2340_v57 = vld [vmem:[%s2271_s17] sm:$0xf] }
  0x70   : > { %v1604_v13 = vld [vmem:[%s2630_s12 + $0x2] sm:$0x3]  ;;  %v521_v14 = vld [vmem:[%s2630_s12] sm:$0x3]  ;;  %v1615_v25 = vld [vmem:[%s2630_s12 + $0x4] sm:$0x3]  ;;  %v532_v40 = vor.u32 %v531_v31, %v528_v30  ;;  %v1610_v54 = vcombine.low %v2311_v28, %v2314_v29 }
  0x71   : > { %1740 = vmatprep.subr.msk.bf16.mxu0 %vm588_vm0, %v1604_v13  ;;  %v590_v15 = vsel %vm588_vm0, %v1604_v13, 0  ;;  %1741 = vmatprep.subr.msk.bf16.mxu1 %vm588_vm0, %v521_v14  ;;  %v658_v16 = vsel %vm588_vm0, %v521_v14, 0  ;;  %v1620_v39 = vld [vmem:[%s2630_s12 + $0x6] sm:$0x3]  ;;  %v542_v41 = vor.u32 %v541_v33, %v537_v32  ;;  %v563_v42 = vshrl.u32 %v2314_v29, 16 }
  0x72   : > { %1687 = vmatpush3.bf16.msra.mxu0 %v590_v15  ;;  %1693 = vmatpush3.bf16.msra.mxu1 %v658_v16  ;;  %v569_v43 = vshll.u32 %v2317_v34, 16  ;;  %v552_v45 = vrot.slane %v550_v36, 4  ;;  %v555_v46 = vrot.slane %v553_v37, 5  ;;  %v561_v47 = vrot.slane %v559_v38, 5  ;;  %v2343_v58 = vld [vmem:[%s2271_s17 + $0x4] sm:$0xf] }
  0x73   : > { %1742 = vmatprep.subr.msk.bf16.mxu0 %vm588_vm0, %v1615_v25  ;;  %1743 = vmatprep.subr.msk.bf16.mxu1 %vm588_vm0, %v1620_v39  ;;  %v726_v48 = vrot.slane %v2317_v34, 5  ;;  %v533_v49 = vrot.slane %v532_v40, 4  ;;  %v543_v50 = vrot.slane %v542_v41, 4  ;;  %v565_v51 = vrot.slane %v563_v42, 4  ;;  %v1632_v62 = vld [vmem:[%s2630_s12 + $0xa] sm:$0x3] }
  0x74   : > { %v571_v52 = vrot.slane %v569_v43, 5  ;;  %v556_v53 = vor.u32 %v555_v46, %v552_v45  ;;  %v743_v55 = vsel %vm588_vm0, %v1615_v25, 0  ;;  %v823_v56 = vsel %vm588_vm0, %v1620_v39, 0  ;;  %v2355_v2 = vld [vmem:[%s2271_s17 + $0xc] sm:$0xf] }
  0x75   : > { %v538_v59 = vsel %vm2330_vm4, %v533_v49, %v537_v32  ;;  %v548_v60 = vsel %vm2330_vm4, %v543_v50, %v547_v35  ;;  %v566_v61 = vor.u32 %v565_v51, %v561_v47  ;;  %1695 = vmatmul.mubr.msk.bf16.vlgmr.msra.gmra.mxu1 %vm581_vm1, %v1610_v54  ;;  %vm712_vm6 = vcmask 1046532   ;;  %v2366_v8 = vld [vmem:[%s2271_s17 + $0x10] sm:$0xf]  ;;  %v1625_v16 = vld [vmem:[%s2630_s12 + $0x8] sm:$0x3] }
  0x76   : > { %v1605_v63 = vcombine.low %v538_v59, %v548_v60  ;;  %v557_v0 = vrot.slane %v556_v53, 4  ;;  %v1613_v1 = vrot.slane %v2289_v17, 9  ;;  %1705 = vmatpush3.bf16.msra.mxu1 %v823_v56  ;;  %vm2357_vm7 = vmor %vm711_vm5, %vm712_vm6  ;;  %v716_v5 = vrot.slane %v2292_v18, 5  ;;  %v1642_v39 = vld [vmem:[%s2630_s12 + $0xe] sm:$0x3] }
  0x77   : > { %v567_v3 = vrot.slane %v566_v61, 4  ;;  %v1621_v6 = vcombine.low %v2340_v57, %v2343_v58  ;;  %v879_v7 = vshrl.u32 %v2340_v57, 16  ;;  %v882_v10 = vshll.u32 %v2340_v57, 16  ;;  %1745 = vmatprep.subr.msk.bf16.mxu1 %vm588_vm0, %v1632_v62  ;;  %v803_v43 = vld [vmem:[%s2271_s17 + $0x14] sm:$0x1] }
  0x78   : > { %1688 = vmatprep.mubr.msk.bf16.mxu0 %vm581_vm1, %v1605_v63  ;;  %v562_v9 = vsel %vm2330_vm4, %v557_v0, %v561_v47  ;;  %v892_v11 = vshrl.u32 %v2343_v58, 16  ;;  %v1614_v12 = vrot.slane %v2311_v28, 9  ;;  %v717_v14 = vsel %vm2357_vm7, %v1613_v1, %v716_v5  ;;  %v800_v28 = vld [vmem:[%s2271_s17 + $0x8] sm:$0x1]  ;;  %v1637_v61 = vld [vmem:[%s2630_s12 + $0xc] sm:$0x3] }
  0x79   : > { %v572_v13 = vsel %vm2330_vm4, %v567_v3, %v571_v52  ;;  %v718_v15 = vrot.slane %v716_v5, 4  ;;  %1706 = vmatprep.mubr.msk.bf16.mxu1 %vm581_vm1, %v1621_v6  ;;  %v723_v17 = vrot.slane %v2314_v29, 5  ;;  %v1622_v20 = vcombine.low %v2355_v2, %v2366_v8  ;;  %v2426_v3 = vld [vmem:[%s2273_s23] sm:$0xf] }
  0x7a   : > { %v1606_v18 = vcombine.low %v562_v9, %v572_v13  ;;  %v903_v21 = vshrl.u32 %v2355_v2, 16  ;;  %v906_v22 = vshll.u32 %v2355_v2, 16  ;;  %v916_v26 = vshrl.u32 %v2366_v8, 16  ;;  %v1083_v9 = vld [vmem:[%s2273_s23 + $0x4] sm:$0xf] }
  0x7b   : > { %v720_v23 = vsel %vm2357_vm7, %v718_v15, %v719_v27  ;;  %v724_v24 = vsel %vm2357_vm7, %v1614_v12, %v723_v17  ;;  %v725_v25 = vrot.slane %v723_v17, 4  ;;  %v941_v30 = vsel %vm588_vm0, %v1625_v16, 0 }
  0x7c   : > { %1689 = vmatmul.mubr.msk.bf16.vlgmr.msra.gmra.mxu0 %vm581_vm1, %v1606_v18  ;;  %v1616_v29 = vcombine.low %v717_v14, %v720_v23  ;;  %v1027_v31 = vsel %vm588_vm0, %v1632_v62, 0  ;;  %v881_v32 = vrot.slane %v879_v7, 4  ;;  %v884_v27 = vrot.slane %v882_v10, 5  ;;  %v2434_v10 = vld [vmem:[%s2273_s23 + $0x8] sm:$0x1] }
  0x7d   : > { %1699 = vmatpush3.bf16.msra.mxu0 %v743_v55  ;;  %v727_v19 = vsel %vm2357_vm7, %v725_v25, %v726_v48  ;;  %v888_v33 = vshll.u32 %v2343_v58, 16  ;;  %v894_v34 = vrot.slane %v892_v11, 4  ;;  %v898_v36 = vshll.u32 %v800_v28, 16  ;;  %1707 = vmatmul.mubr.msk.bf16.vlgmr.msra.gmra.mxu1 %vm581_vm1, %v1622_v20  ;;  %v1085_v23 = vld [vmem:[%s2273_s23 + $0xc] sm:$0xf] }
  0x7e   : > { %1700 = vmatprep.mubr.msk.bf16.mxu0 %vm581_vm1, %v1616_v29  ;;  %1744 = vmatprep.subr.msk.bf16.mxu0 %vm588_vm0, %v1625_v16  ;;  %v1617_v35 = vcombine.low %v724_v24, %v727_v19  ;;  %v1630_v37 = vrot.slane %v2340_v57, 9  ;;  %v1000_v38 = vrot.slane %v2343_v58, 5  ;;  %v885_v40 = vor.u32 %v884_v27, %v881_v32  ;;  %v1086_v29 = vld [vmem:[%s2273_s23 + $0x10] sm:$0xf] }
  0x7f   : > { %v890_v41 = vrot.slane %v888_v33, 5  ;;  %v1003_v42 = vrot.slane %v800_v28, 5  ;;  %v905_v45 = vrot.slane %v903_v21, 4  ;;  %1717 = vmatpush3.bf16.msra.mxu1 %v1027_v31  ;;  %v900_v46 = vrot.slane %v898_v36, 5 }
  0x80   : > { %v1001_v47 = vsel %vm2357_vm7, %v1630_v37, %v1000_v38  ;;  %v1002_v48 = vrot.slane %v1000_v38, 4  ;;  %v908_v49 = vrot.slane %v906_v22, 5  ;;  %v886_v50 = vrot.slane %v885_v40, 4  ;;  %1747 = vmatprep.subr.msk.bf16.mxu1 %vm588_vm0, %v1642_v39 }
  0x81   : > { %v895_v51 = vor.u32 %v894_v34, %v890_v41  ;;  %v912_v52 = vshll.u32 %v2366_v8, 16  ;;  %v918_v53 = vrot.slane %v916_v26, 4  ;;  %v922_v56 = vshll.u32 %v803_v43, 16 }
  0x82   : > { %v1004_v54 = vsel %vm2357_vm7, %v1002_v48, %v1003_v42  ;;  %v909_v55 = vor.u32 %v908_v49, %v905_v45  ;;  %v1631_v57 = vrot.slane %v2355_v2, 9  ;;  %v891_v58 = vsel %vm2330_vm4, %v886_v50, %v890_v41 }
  0x83   : > { %v896_v59 = vrot.slane %v895_v51, 4  ;;  %v1633_v60 = vcombine.low %v1001_v47, %v1004_v54  ;;  %v914_v62 = vrot.slane %v912_v52, 5  ;;  %v1007_v0 = vrot.slane %v2366_v8, 5 }
  0x84   : > { %1701 = vmatmul.mubr.msk.bf16.vlgmr.msra.gmra.mxu0 %vm581_vm1, %v1617_v35  ;;  %v910_v63 = vrot.slane %v909_v55, 4  ;;  %v1010_v1 = vrot.slane %v803_v43, 5  ;;  %v924_v6 = vrot.slane %v922_v56, 5  ;;  %v1225_v7 = vsel %vm588_vm0, %v1642_v39, 0  ;;  %v1649_v35 = vld [vmem:[%s2630_s12 + $0x10] sm:$0x3] }
  0x85   : > { %1711 = vmatpush3.bf16.msra.mxu0 %v941_v30  ;;  %v901_v2 = vsel %vm2330_vm4, %v896_v59, %v900_v46  ;;  %1718 = vmatprep.mubr.msk.bf16.mxu1 %vm581_vm1, %v1633_v60  ;;  %v919_v5 = vor.u32 %v918_v53, %v914_v62  ;;  %v1008_v12 = vsel %vm2357_vm7, %v1631_v57, %v1007_v0  ;;  %v1009_v13 = vrot.slane %v1007_v0, 4  ;;  %v1087_v30 = vld [vmem:[%s2273_s23 + $0x14] sm:$0x1]  ;;  %s2635_s23 = sld [smem:[#allocation15_spill]] }
  0x86   : > { %v1626_v11 = vcombine.low %v891_v58, %v901_v2  ;;  %1746 = vmatprep.subr.msk.bf16.mxu0 %vm588_vm0, %v1637_v61  ;;  %v915_v8 = vsel %vm2330_vm4, %v910_v63, %v914_v62  ;;  %v1638_v15 = vcombine.low %v2426_v3, %v1083_v9  ;;  %v1163_v16 = vshrl.u32 %v2426_v3, 16 }
  0x87   : > { %v920_v14 = vrot.slane %v919_v5, 4  ;;  %v1166_v17 = vshll.u32 %v2426_v3, 16  ;;  %v1011_v18 = vsel %vm2357_vm7, %v1009_v13, %v1010_v1  ;;  %v1176_v20 = vshrl.u32 %v1083_v9, 16 }
  0x88   : > { %1712 = vmatprep.mubr.msk.bf16.mxu0 %vm581_vm1, %v1626_v11  ;;  %v1172_v21 = vshll.u32 %v1083_v9, 16  ;;  %v1182_v22 = vshll.u32 %v2434_v10, 16  ;;  %v1634_v25 = vcombine.low %v1008_v12, %v1011_v18  ;;  %v1165_v26 = vrot.slane %v1163_v16, 4 }
  0x89   : > { %v925_v24 = vsel %vm2330_vm4, %v920_v14, %v924_v6  ;;  %v1168_v28 = vrot.slane %v1166_v17, 5  ;;  %v1107_v32 = vsel %vm588_vm0, %v1637_v61, 0  ;;  %v1178_v27 = vrot.slane %v1176_v20, 4 }
  0x8a   : > { %v1627_v31 = vcombine.low %v915_v8, %v925_v24  ;;  %v1174_v19 = vrot.slane %v1172_v21, 5  ;;  %1719 = vmatmul.mubr.msk.bf16.vlgmr.msra.gmra.mxu1 %vm581_vm1, %v1634_v25  ;;  %v1184_v34 = vrot.slane %v1182_v22, 5  ;;  %v1187_v36 = vshrl.u32 %v1085_v23, 16 }
  0x8b   : > { %v1169_v33 = vor.u32 %v1168_v28, %v1165_v26  ;;  %v1190_v37 = vshll.u32 %v1085_v23, 16  ;;  %1729 = vmatpush3.bf16.msra.mxu1 %v1225_v7  ;;  %v1200_v39 = vshrl.u32 %v1086_v29, 16  ;;  %v1196_v40 = vshll.u32 %v1086_v29, 16  ;;  %p1654_p10 = scmp.ne.s32.totalorder %s2635_s23, 7 }
  0x8c   : > { %1713 = vmatmul.mubr.msk.bf16.vlgmr.msra.gmra.mxu0 %vm581_vm1, %v1627_v31  ;;  %v1179_v38 = vor.u32 %v1178_v27, %v1174_v19  ;;  %v1206_v41 = vshll.u32 %v1087_v30, 16  ;;  %v1639_v43 = vcombine.low %v1085_v23, %v1086_v29  ;;  %v1189_v45 = vrot.slane %v1187_v36, 4 }
  0x8d   : > { %1723 = vmatpush3.bf16.msra.mxu0 %v1107_v32  ;;  %1724 = vmatprep.mubr.msk.bf16.mxu0 %vm581_vm1, %v1638_v15  ;;  %v1170_v42 = vrot.slane %v1169_v33, 4  ;;  %v1192_v46 = vrot.slane %v1190_v37, 5  ;;  %v1198_v48 = vrot.slane %v1196_v40, 5  ;;  %v1202_v49 = vrot.slane %v1200_v39, 4 }
  0x8e   : > { %v1180_v47 = vrot.slane %v1179_v38, 4  ;;  %1748 = vmatprep.subr.msk.bf16.mxu0 %vm588_vm0, %v1649_v35  ;;  %v1208_v50 = vrot.slane %v1206_v41, 5  ;;  %v1647_v53 = vrot.slane %v2426_v3, 9  ;;  %v1284_v54 = vrot.slane %v1083_v9, 5 }
  0x8f   : > { %v1175_v51 = vsel %vm2330_vm4, %v1170_v42, %v1174_v19  ;;  %v1193_v52 = vor.u32 %v1192_v46, %v1189_v45  ;;  %v1203_v56 = vor.u32 %v1202_v49, %v1198_v48  ;;  %v1287_v57 = vrot.slane %v2434_v10, 5 }
  0x90   : > { %v1185_v55 = vsel %vm2330_vm4, %v1180_v47, %v1184_v34  ;;  %v1648_v58 = vrot.slane %v1085_v23, 9  ;;  %v1285_v61 = vsel %vm2357_vm7, %v1647_v53, %v1284_v54  ;;  %v1286_v62 = vrot.slane %v1284_v54, 4 }
  0x91   : > { %v1643_v59 = vcombine.low %v1175_v51, %v1185_v55  ;;  %v1194_v60 = vrot.slane %v1193_v52, 4  ;;  %v1204_v63 = vrot.slane %v1203_v56, 4  ;;  %v1311_v0 = vsel %vm588_vm0, %v1649_v35, 0 }
  0x92   : > { %v1291_v1 = vrot.slane %v1086_v29, 5  ;;  %v1294_v2 = vrot.slane %v1087_v30, 5  ;;  %v1288_v5 = vsel %vm2357_vm7, %v1286_v62, %v1287_v57 }
  0x93   : > { %1730 = vmatprep.mubr.msk.bf16.mxu1 %vm581_vm1, %v1643_v59  ;;  %v1199_v3 = vsel %vm2330_vm4, %v1194_v60, %v1198_v48  ;;  %v1209_v6 = vsel %vm2330_vm4, %v1204_v63, %v1208_v50  ;;  %v1650_v7 = vcombine.low %v1285_v61, %v1288_v5 }
  0x94   : > { %1725 = vmatmul.mubr.msk.bf16.vlgmr.msra.gmra.mxu0 %vm581_vm1, %v1639_v43  ;;  %v1293_v9 = vrot.slane %v1291_v1, 4  ;;  %v1644_v10 = vcombine.low %v1199_v3, %v1209_v6  ;;  %v1292_v11 = vsel %vm2357_vm7, %v1648_v58, %v1291_v1 }
  0x95   : > { %1735 = vmatpush3.bf16.msra.mxu0 %v1311_v0  ;;  %1736 = vmatprep.mubr.msk.bf16.mxu0 %vm581_vm1, %v1650_v7 }
  0x96   : > { %v1295_v8 = vsel %vm2357_vm7, %v1293_v9, %v1294_v2  ;;  %1731 = vmatmul.mubr.msk.bf16.vlgmr.msra.gmra.mxu1 %vm581_vm1, %v1644_v10 }
  0x97   : > { %v1651_v12 = vcombine.low %v1292_v11, %v1295_v8 }
  0x9c   : > { %1737 = vmatmul.mubr.msk.bf16.vlgmr.msra.gmra.mxu0 %vm581_vm1, %v1651_v12 }
 0x135   : > { %v1696_v13 = vpop.f32.mrf.mxu1 }
 0x137   : > { %v694_v44 = vpop.f32.mrf.mxu1 }
 0x139   : > { %v1697_v14 = vpop.f32.mrf.mxu1 }
 0x13b   : > { %v697_v16 = vpop.f32.mrf.mxu1 }
 0x13c   : > { %v1690_v15 = vpop.f32.mrf.mxu0 }
 0x13d   : > { %v1708_v18 = vpop.f32.mrf.mxu1  ;;  %v703_v27 = vadd.f32 %v1696_v13, %v1690_v15 }
 0x13e   : > { %v626_v17 = vpop.f32.mrf.mxu0 }
 0x13f   : > { %v859_v21 = vpop.f32.mrf.mxu1  ;;  %v695_v31 = vadd.f32 %v694_v44, %v626_v17 }
 0x140   : > { %v1691_v20 = vpop.f32.mrf.mxu0 }
 0x141   : > { %v1709_v23 = vpop.f32.mrf.mxu1  ;;  %v706_v37 = vadd.f32 %v1697_v14, %v1691_v20 }
 0x142   : > { %v629_v22 = vpop.f32.mrf.mxu0 }
 0x143   : > { %v862_v4 = vpop.f32.mrf.mxu1  ;;  %v698_v33 = vadd.f32 %v697_v16, %v629_v22 }
 0x144   : > { %v1702_v24 = vpop.f32.mrf.mxu0 }
 0x145   : > { %v796_v38 = vadd.f32 %v1702_v24, %v703_v27 }
 0x146   : > { %v779_v25 = vpop.f32.mrf.mxu0 }
 0x147   : > { %v794_v34 = vadd.f32 %v779_v25, %v695_v31  ;;  %v876_v46 = vadd.f32 %v1708_v18, %v796_v38 }
 0x148   : > { %v1703_v26 = vpop.f32.mrf.mxu0 }
 0x149   : > { %v874_v41 = vadd.f32 %v859_v21, %v794_v34  ;;  %v797_v42 = vadd.f32 %v1703_v26, %v706_v37  ;;  %v1366_v34 = vld [vmem:[#allocation2] sm:$0x1]  ;;  %v1378_v37 = vld [vmem:[#allocation3] sm:$0x1] }
 0x14a   : > { %v782_v28 = vpop.f32.mrf.mxu0  ;;  %v1720_v29 = vpop.f32.mrf.mxu1 }
 0x14b   : > { %v795_v39 = vadd.f32 %v782_v28, %v698_v33  ;;  %v877_v50 = vadd.f32 %v1709_v23, %v797_v42 }
 0x14c   : > { %v1714_v30 = vpop.f32.mrf.mxu0  ;;  %v1063_v32 = vpop.f32.mrf.mxu1 }
 0x14d   : > { %v875_v47 = vadd.f32 %v862_v4, %v795_v39  ;;  %v994_v51 = vadd.f32 %v1714_v30, %v876_v46 }
 0x14e   : > { %v977_v19 = vpop.f32.mrf.mxu0  ;;  %v1721_v35 = vpop.f32.mrf.mxu1 }
 0x14f   : > { %v992_v48 = vadd.f32 %v977_v19, %v874_v41  ;;  %v1080_v59 = vadd.f32 %v1720_v29, %v994_v51 }
 0x150   : > { %v1715_v36 = vpop.f32.mrf.mxu0  ;;  %v1066_v43 = vpop.f32.mrf.mxu1 }
 0x151   : > { %v1078_v55 = vadd.f32 %v1063_v32, %v992_v48  ;;  %v995_v56 = vadd.f32 %v1715_v36, %v877_v50 }
 0x152   : > { %v980_v40 = vpop.f32.mrf.mxu0 }
 0x153   : > { %v993_v52 = vadd.f32 %v980_v40, %v875_v47  ;;  %v1081_v0 = vadd.f32 %v1721_v35, %v995_v56 }
 0x154   : > { %v1726_v45 = vpop.f32.mrf.mxu0 }
 0x155   : > { %v1079_v60 = vadd.f32 %v1066_v43, %v993_v52  ;;  %v1160_v1 = vadd.f32 %v1726_v45, %v1080_v59 }
 0x156   : > { %v1143_v49 = vpop.f32.mrf.mxu0  ;;  %v1732_v53 = vpop.f32.mrf.mxu1 }
 0x157   : > { %v1158_v61 = vadd.f32 %v1143_v49, %v1078_v55  ;;  %v1278_v10 = vadd.f32 %v1732_v53, %v1160_v1 }
 0x158   : > { %v1727_v54 = vpop.f32.mrf.mxu0  ;;  %v1261_v57 = vpop.f32.mrf.mxu1 }
 0x159   : > { %v1276_v5 = vadd.f32 %v1261_v57, %v1158_v61  ;;  %v1161_v6 = vadd.f32 %v1727_v54, %v1081_v0 }
 0x15a   : > { %v1146_v58 = vpop.f32.mrf.mxu0  ;;  %v1733_v62 = vpop.f32.mrf.mxu1 }
 0x15b   : > { %v1159_v2 = vadd.f32 %v1146_v58, %v1079_v60  ;;  %v1279_v13 = vadd.f32 %v1733_v62, %v1161_v6 }
 0x15c   : > { %v1738_v63 = vpop.f32.mrf.mxu0  ;;  %v1264_v7 = vpop.f32.mrf.mxu1 }
 0x15d   : > { %v1277_v11 = vadd.f32 %v1264_v7, %v1159_v2  ;;  %v1364_v44 = vadd.f32 %v1738_v63, %v1278_v10 }
 0x15e   : > { %v1347_v3 = vpop.f32.mrf.mxu0 }
 0x15f   : > { %v1362_v8 = vadd.f32 %v1347_v3, %v1276_v5  ;;  %v1381_v20 = vmul.f32 %v1364_v44, %v1364_v44 }
 0x160   : > { %v1739_v9 = vpop.f32.mrf.mxu0 }
 0x161   : > { %v1379_v15 = vmul.f32 %v1362_v8, %v1362_v8  ;;  %v1365_v16 = vadd.f32 %v1739_v9, %v1279_v13 }
 0x162   : > { %v1350_v12 = vpop.f32.mrf.mxu0 }
 0x163   : > { %v1363_v14 = vadd.f32 %v1350_v12, %v1277_v11  ;;  %v1382_v23 = vmul.f32 %v1365_v16, %v1365_v16 }
 0x165   : > { %v1367_v17 = vadd.f32 %v1363_v14, %v1362_v8  ;;  %v1380_v18 = vmul.f32 %v1363_v14, %v1363_v14 }
 0x167   : > { %v1368_v21 = vadd.f32 %v1367_v17, %v1364_v44  ;;  %v1383_v22 = vadd.f32 %v1380_v18, %v1379_v15 }
 0x169   : > { %v1369_v24 = vadd.f32 %v1368_v21, %v1365_v16  ;;  %v1384_v25 = vadd.f32 %v1383_v22, %v1381_v20 }
 0x16b   : > { %v1370_v4 = vrot.slane %v1369_v24, 4  ;;  %v1385_v26 = vadd.f32 %v1384_v25, %v1382_v23 }
 0x16d   : > { %v1371_v28 = vadd.f32 %v1370_v4, %v1369_v24  ;;  %v1386_v29 = vrot.slane %v1385_v26, 4 }
 0x16f   : > { %v1372_v30 = vrot.slane %v1371_v28, 2  ;;  %v1387_v31 = vadd.f32 %v1386_v29, %v1385_v26 }
 0x171   : > { %v1373_v32 = vadd.f32 %v1372_v30, %v1371_v28  ;;  %v1388_v19 = vrot.slane %v1387_v31, 2 }
 0x173   : > { %v1374_v27 = vrot.slane %v1373_v32, 1  ;;  %v1389_v33 = vadd.f32 %v1388_v19, %v1387_v31 }
 0x175   : > { %v1375_v35 = vadd.f32 %v1374_v27, %v1373_v32  ;;  %v1390_v36 = vrot.slane %v1389_v33, 1 }
 0x177   : > { %v1376_v38 = vadd.f32 %v1375_v35, %v1366_v34  ;;  %v1391_v39 = vadd.f32 %v1390_v36, %v1389_v33  ;;  %1397 = sbr.rel (%p1654_p10) target bundleno = 388 (0x184), region = 167 }
 0x179   : > { %1377 = vst [vmem:[#allocation2] sm:$0x1] %v1376_v38  ;;  %v1392_v40 = vadd.f32 %v1391_v39, %v1378_v37 }
 0x17b   : > { %1393 = vst [vmem:[#allocation3] sm:$0x1] %v1392_v40 }
 0x180   : > { %v1398_v41 = vld [vmem:[#allocation2] sm:$0x1] }
 0x181   : > { %1399 = vst [vmem:[%s493_s0] sm:$0x1] %v1398_v41 }
 0x182   : > { %v1400_v42 = vld [vmem:[#allocation3] sm:$0x1] }
 0x183   : > { %1401 = vst [vmem:[%s2597_s1] sm:$0x1] %v1400_v42 }
 0x184 PF: > { %s2636_s5 = sld [smem:[#allocation16_spill]]  ;;  %s1419_s17 = sshll.u32 %s493_s0, 4  ;;  %s1420_s17 = int_to_ptr.vmem [resolvable:$true] %s1419_s17 }
 0x185   : > { %s2637_s25 = sld [smem:[#allocation25_spill]]  ;;  %s1403_s2 = scalar_lea.sflag [#allocation8], %s2267_s7 }
 0x186   : > { %s1887_s16 = scalar_lea.vmem %s1420_s17, 16  ;;  %s2060_s29 = smov [#allocation7]  }
 0x187   : > { %p1888_p11 = scmp.ne.s32.totalorder %s1420_s17, %s1887_s16  ;;  %s1891_s23 = sshll.u32 %s2060_s29, 4  ;;  %s1892_s23 = int_to_ptr.vmem [resolvable:$false] %s1891_s23 }
 0x188   : > { %s1893_s1 = scalar_lea.vmem %s1892_s23, 32  ;;  %p1894_p0 = scmp.lt.s32.totalorder %s1420_s17, %s1892_s23 }
 0x189   : > { %p1889_p12 = pnand %p1888_p11, %p2231_p5  ;;  %p1895_p1 = scmp.lt.s32.totalorder %s1893_s1, %s1887_s16 }
 0x18a   : > { %s2598_s15 = sshll.u32 %s2636_s5, 4 }
 0x18b   : > { %s2638_s8 = smov %s2637_s25  ;;  %s1417_s11 = scalar_lea.hbm %s2637_s25, %s2598_s15 }
 0x18c   : > { %p1890_p13 = pneg %p1889_p12  ;;  %p1896_p3 = por %p1895_p1, %p1894_p0 }
 0x18e   : > { %p1897_p7 = pnand %p1896_p3, %p1890_p13 }
 0x190   : > { %1900 = shalt.err (!%p1897_p7)
}
 0x191   : > { %s1901_s13 = scalar_lea.hbm %s1417_s11, 16  ;;  %s1905_s25 = scalar_lea.hbm %s2638_s8, 32 }
 0x192   : > { %p1902_p4 = scmp.ne.s32.totalorder %s1417_s11, %s1901_s13  ;;  %p1906_p9 = scmp.lt.s32.totalorder %s1417_s11, %s2638_s8 }
 0x193   : > { %p1907_p10 = scmp.lt.s32.totalorder %s1905_s25, %s1901_s13 }
 0x194   : > { %p1903_p6 = pnand %p1902_p4, %p2231_p5 }
 0x195   : > { %p1908_p11 = por %p1907_p10, %p1906_p9 }
 0x196   : > { %p1904_p8 = pneg %p1903_p6 }
 0x198   : > { %p1909_p12 = pnand %p1908_p11, %p1904_p8 }
 0x19a   : > { %1912 = shalt.err (!%p1909_p12)
}
 0x19b   : > { %1756 = dma.vmem_to_hbm [thread:$0]  (%p2231_p5), %s1420_s17, 16, %s1417_s11, %s1403_s2  }
 0x19c   : > { %s2639_s1 = sshll.u32 %s2636_s5, 4  ;;  %s2640_s23 = sld [smem:[#allocation26_spill]] }
 0x19d   : > { %s2642_s10 = scalar_lea.vmem [#allocation9], %s2267_s7  ;;  %s1407_s12 = scalar_lea.sflag [#allocation10], %s2267_s7 }
 0x19e   : > { %s1432_s30 = sshll.u32 %s2642_s10, 4  ;;  %s2061_s13 = smov [#allocation9]   ;;  %s1433_s30 = int_to_ptr.vmem [resolvable:$true] %s1432_s30 }
 0x19f   : > { %s1913_s15 = scalar_lea.vmem %s1433_s30, 16  ;;  %s1917_s25 = sshll.u32 %s2061_s13, 4  ;;  %s1918_s25 = int_to_ptr.vmem [resolvable:$false] %s1917_s25 }
 0x1a0   : > { %p1914_p13 = scmp.ne.s32.totalorder %s1433_s30, %s1913_s15  ;;  %s1919_s8 = scalar_lea.vmem %s1918_s25, 32 }
 0x1a1   : > { %p1920_p3 = scmp.lt.s32.totalorder %s1433_s30, %s1918_s25  ;;  %p1921_p7 = scmp.lt.s32.totalorder %s1919_s8, %s1913_s15 }
 0x1a2   : > { %s2641_s0 = smov %s2640_s23  ;;  %s1430_s21 = scalar_lea.hbm %s2640_s23, %s2639_s1 }
 0x1a3   : > { %p1915_p0 = pnand %p1914_p13, %p2231_p5  ;;  %p1922_p4 = por %p1921_p7, %p1920_p3 }
 0x1a5   : > { %p1916_p1 = pneg %p1915_p0 }
 0x1a7   : > { %p1923_p6 = pnand %p1922_p4, %p1916_p1 }
 0x1a9   : > { %1926 = shalt.err (!%p1923_p6)
}
 0x1aa   : > { %s1927_s5 = scalar_lea.hbm %s1430_s21, 16  ;;  %s1931_s11 = scalar_lea.hbm %s2641_s0, 32 }
 0x1ab   : > { %p1928_p8 = scmp.ne.s32.totalorder %s1430_s21, %s1927_s5  ;;  %p1932_p11 = scmp.lt.s32.totalorder %s1430_s21, %s2641_s0 }
 0x1ac   : > { %p1933_p12 = scmp.lt.s32.totalorder %s1931_s11, %s1927_s5 }
 0x1ad   : > { %p1929_p9 = pnand %p1928_p8, %p2231_p5 }
 0x1ae   : > { %p1934_p13 = por %p1933_p12, %p1932_p11 }
 0x1af   : > { %p1930_p10 = pneg %p1929_p9 }
 0x1b1   : > { %p1935_p0 = pnand %p1934_p13, %p1930_p10 }
 0x1b3   : > { %1938 = shalt.err (!%p1935_p0)
}
 0x1b4   : > { %1757 = dma.vmem_to_hbm [thread:$0]  (%p2231_p5), %s1433_s30, 16, %s1430_s21, %s1407_s12  }
 0x1b5 PF: > { %p1767_p1 = scmp.ge.s32.totalorder %s2057_s6, 2  ;;  %s1444_s8 = sand.u32 1, %s2005_s18  }
 0x1b6   : > { %s1445_s1 = scalar_lea.sflag [#allocation8], %s1444_s8 }
 0x1b7   : > { %p1761_p3 = pnand %p1767_p1, %p2235_p2 }
 0x1b9   : > { %p1762_p7 = pneg %p1761_p3 }
 0x1bb   : > { %1996 = dma.done.wait (%p1762_p7), %s1445_s1, 16  }
 0x1bc   : > { %1998 = vsyncadd (%p1762_p7), %s1445_s1, 4294967280  ;;  %s1453_s16 = scalar_lea.sflag [#allocation10], %s1444_s8 }
 0x1bd   : > { %2000 = dma.done.wait (%p1762_p7), %s1453_s16, 16  }
 0x1be   : > { %2002 = vsyncadd (%p1762_p7), %s1453_s16, 4294967280  ;;  %s22_s6 = sadd.s32 1, %s2057_s6   ;;  %s2644_s30 = sld [smem:[#allocation17_spill]] }
 0x1bf   : > { %p2536_p4 = scmp.ge.s32.totalorder %s22_s6, 18   ;;  %s2645_s14 = sld [smem:[#allocation18_spill]] }
 0x1c0   : > { %s2646_s29 = sld [smem:[#allocation19_spill]]  ;;  %s2649_s18 = smov %s2009_s19 }
 0x1c1   : > { %s2647_s12 = sld [smem:[#allocation20_spill]]  ;;  %s2650_s19 = smov %s2013_s20 }
 0x1c2   : > { %s2651_s20 = smov %s2223_s28  ;;  %s2652_s21 = smov %s2021_s22 }
 0x1c3   : > { %s2653_s22 = smov %s2217_s4  ;;  %s2654_s23 = smov %s2029_s24 }
 0x1c4   : > { %s2655_s24 = smov %s2204_s3  ;;  %s2656_s25 = smov %s2037_s26 }
 0x1c5   : > { %s2657_s26 = smov %s2201_s9  ;;  %s2658_s27 = smov %s2644_s30 }
 0x1c6   : > { %s2659_s28 = smov %s2645_s14  ;;  %21 = sbr.rel (!%p2536_p4) target bundleno = 17 (0x11), region = 248 }
 0x1c7   : > { %s2660_s30 = smov %s2647_s12 }
 0x1cb   :  { %1457 = vsyncpa [#allocation8], 1 }
 0x1cc   :  { %1459 = vsyncpa [#allocation8 + $0x1], 1 }
 0x1cd   :  { %1460 = vsyncpa [#allocation10], 1 }
 0x1ce   :  { %1462 = vsyncpa [#allocation10 + $0x1], 1 }

</bundles_post_ra>
